<compile_context>
chip_gen: v6e
topology: v6e:2x2x1
jax: 0.10.0
libtpu: 0.0.40
codegen_flags: <defaults>
</compile_context>

<pallas_src>
import jax
import jax.numpy as jnp
from jax.experimental import pallas as pl
from jax.experimental.pallas import tpu as pltpu


# ----------------------------- Pallas kernel ------------------------------ #
def _detect_kernel(params_ref, gb_ref, x_ref, o_ref):
    # params_ref: SMEM (na, 3) = [2*stride, 4*anchor_w, 4*anchor_h]
    # gb_ref:     VMEM (2, TS)  = (grid - 0.5) * stride   (row0 = x, row1 = y)
    # x_ref/o_ref: VMEM (no, TS) -- spatial on the lane axis (dense).
    a = pl.program_id(1)
    two_stride = params_ref[a, 0]
    cw = params_ref[a, 1]
    ch = params_ref[a, 2]

    s = jax.nn.sigmoid(x_ref[...].astype(jnp.float32))      # (no, TS)
    gb = gb_ref[...]                                         # (2, TS)

    # xy: (sig*2 - 0.5 + grid) * stride  ==  sig*(2*stride) + (grid-0.5)*stride
    o_ref[0:2, :] = (s[0:2, :] * two_stride + gb).astype(o_ref.dtype)
    # wh: (sig*2)**2 * anchor  ==  sig*sig*(4*anchor)
    o_ref[2:3, :] = (s[2:3, :] * s[2:3, :] * cw).astype(o_ref.dtype)
    o_ref[3:4, :] = (s[3:4, :] * s[3:4, :] * ch).astype(o_ref.dtype)
    # obj / class scores: plain sigmoid
    o_ref[4:, :] = s[4:, :].astype(o_ref.dtype)


# ----------------------------- tiling helpers ------------------------------ #
def _vmem_capacity_bytes():
    try:
        info = pltpu.get_tpu_info()
        cap = int(getattr(info, "vmem_capacity_bytes", 0))
        if cap > 0:
            return cap
    except Exception:
        pass
    return 64 * 1024 * 1024  # conservative default (v7x per-core VMEM)


def _pick_spatial_tile(S, no, itemsize, block_budget_bytes, leading_steps):
    """Largest multiple-of-128 spatial tile dividing S whose double-buffered
    in+out footprint fits the budget.  Falls back to a full-extent block for
    small/ragged levels (always legal)."""
    if S % 128 != 0:
        return S
    bytes_per_lane = 4 * no * itemsize           # in + out, double buffered
    cap = max(128, (block_budget_bytes // bytes_per_lane) // 128 * 128)
    ts = min(S, cap)
    while S % ts != 0:
        ts -= 128
    # keep >= 2 total grid steps so v7x's two TensorCores both get work
    if leading_steps * (S // ts) < 2 and S % 256 == 0:
        ts = min(ts, S // 2)
        while S % ts != 0:
            ts -= 128
    return ts


def _detect_level(params, gb, x4, *, ts, vmem_limit):
    bs, na, no, S = x4.shape
    return pl.pallas_call(
        _detect_kernel,
        out_shape=jax.ShapeDtypeStruct(x4.shape, x4.dtype),
        grid=(bs, na, S // ts),
        in_specs=[
            pl.BlockSpec(memory_space=pltpu.MemorySpace.SMEM),            # params
            pl.BlockSpec((2, ts), lambda b, a, j: (0, j)),                # grid bias
            pl.BlockSpec((None, None, no, ts), lambda b, a, j: (b, a, 0, j)),
        ],
        out_specs=pl.BlockSpec((None, None, no, ts), lambda b, a, j: (b, a, 0, j)),
        compiler_params=pltpu.CompilerParams(
            dimension_semantics=("parallel", "parallel", "parallel"),
            vmem_limit_bytes=int(vmem_limit),
        ),
    )(params, gb, x4)


# ------------------------------ JAX wrapper -------------------------------- #
def detect_forward(xs, anchors, strides, nc):
    """Inference-mode Detect.forward.

    xs:       list of NCHW feature maps, xs[i].shape == (bs, na*no, ny, nx)
    anchors:  (nl, na, 2) float array (w, h)
    strides:  (nl,) float
    Returns (z_cat, x_perm_list) matching PyTorch:
      z_cat:       (bs, sum_i na*ny_i*nx_i, no)
      x_perm_list: [(bs, na, ny_i, nx_i, no), ...]
    """
    nl, na, _ = anchors.shape
    no = nc + 5
    anchors = anchors.astype(jnp.float32)
    strides = strides.astype(jnp.float32)

    cap = _vmem_capacity_bytes()
    vmem_limit = min(cap // 2, 100 * 1024 * 1024)
    block_budget = cap // 4

    z, x_perm = [], []
    for i, xi in enumerate(xs):
        bs, _, ny, nx = xi.shape
        S = ny * nx

        # Module output #2: permuted feature map (pure XLA layout op).
        xp = xi.reshape(bs, na, no, ny, nx).transpose(0, 1, 3, 4, 2)
        x_perm.append(xp)

        # Lane-dense kernel view of the raw NCHW data (free reshape, no copy).
        x4 = xi.reshape(bs, na, no, S)

        # Tiny per-level constants (no full-size aux slab).
        stride_i = strides[i]
        yy, xx = jnp.meshgrid(jnp.arange(ny, dtype=jnp.float32),
                              jnp.arange(nx, dtype=jnp.float32), indexing="ij")
        gb = (jnp.stack([xx.reshape(S), yy.reshape(S)], axis=0) - 0.5) * stride_i   # (2, S)
        params = jnp.stack(
            [jnp.full((na,), 2.0, jnp.float32) * stride_i,
             4.0 * anchors[i, :, 0],
             4.0 * anchors[i, :, 1]],
            axis=1,
        )                                                                            # (na, 3)

        ts = _pick_spatial_tile(S, no, x4.dtype.itemsize, block_budget, bs * na)
        y4 = _detect_level(params, gb, x4, ts=ts, vmem_limit=vmem_limit)

        # Back to the module's z layout; this permute shares its cost class with
        # the x_perm permute the module must return anyway.
        z_i = y4.reshape(bs, na, no, ny, nx).transpose(0, 1, 3, 4, 2)
        z.append(z_i.reshape(bs, na * S, no))

    return jnp.concatenate(z, axis=1), x_perm


# ------------------------------ reference ---------------------------------- #
def detect_reference(xs, anchors, strides, nc):
    nl, na, _ = anchors.shape
    no = nc + 5
    z = []
    for i, xi in enumerate(xs):
        bs, _, ny, nx = xi.shape
        xp = xi.reshape(bs, na, no, ny, nx).transpose(0, 1, 3, 4, 2)
        gy, gx = jnp.meshgrid(jnp.arange(ny, dtype=jnp.float32),
                              jnp.arange(nx, dtype=jnp.float32), indexing="ij")
        grid = jnp.stack((gx, gy), axis=-1)[None, None]       # (1,1,ny,nx,2)
        y = jax.nn.sigmoid(xp)
        xy = (y[..., 0:2] * 2.0 - 0.5 + grid) * strides[i]
        wh = (y[..., 2:4] * 2.0) ** 2 * anchors[i].reshape(1, na, 1, 1, 2)
        y = jnp.concatenate([xy, wh, y[..., 4:]], axis=-1)
        z.append(y.reshape(bs, -1, no))
    return jnp.concatenate(z, axis=1)


# --------------------------------- main ------------------------------------ #
if __name__ == "__main__":
    key = jax.random.PRNGKey(0)

    nc = 15                     # -> no = 20
    nl, na = 3, 3
    no = nc + 5
    bs = 2
    spatial = [8, 4, 2]
    strides = jnp.array([4.0, 8.0, 16.0], dtype=jnp.float32)
    anchors = jnp.array(
        [[10, 13, 16, 30, 33, 23],
         [30, 61, 62, 45, 59, 119],
         [116, 90, 156, 198, 373, 326]],
        dtype=jnp.float32,
    ).reshape(nl, na, 2)

    xs = []
    for i, s in enumerate(spatial):
        key, sub = jax.random.split(key)
        xs.append(jax.random.normal(sub, (bs, na * no, s, s), dtype=jnp.float32))

    z_cat, x_perm = detect_forward(xs, anchors, strides, nc)
    z_cat = jax.block_until_ready(z_cat)
    for xp in x_perm:
        jax.block_until_ready(xp)

    z_ref = detect_reference(xs, anchors, strides, nc)
    assert z_cat.shape == (bs, sum(na * s * s for s in spatial), no)
    assert all(xp.shape == (bs, na, s, s, no) for xp, s in zip(x_perm, spatial))
    assert jnp.allclose(z_cat, z_ref, atol=1e-5, rtol=1e-5)

    print("KERNEL_OK")
</pallas_src>

<mosaic_0001>
module attributes {stable_mosaic.version = 11 : i64} {
  func.func @_detect_kernel(%arg0: i32, %arg1: i32, %arg2: i32, %arg3: memref<3x3xf32, #tpu.memory_space<smem>>, %arg4: memref<2x64xf32, #tpu.memory_space<vmem>>, %arg5: memref<1x1x20x64xf32, #tpu.memory_space<vmem>>, %arg6: memref<1x1x20x64xf32, #tpu.memory_space<vmem>>) attributes {dimension_semantics = [#tpu.dimension_semantics<parallel>, #tpu.dimension_semantics<parallel>, #tpu.dimension_semantics<parallel>], iteration_bounds = array<i64: 2, 3, 1>, scalar_prefetch = 0 : i64, scratch_operands = 0 : i64, tpu.core_type = #tpu.core_type<tc>, window_params = [{transform_indices = @transform_0, window_bounds = array<i64: 3, 3>}, {transform_indices = @transform_1, window_bounds = array<i64: 2, 64>}, {transform_indices = @transform_2, window_bounds = array<i64: 1, 1, 20, 64>}, {transform_indices = @transform_3, window_bounds = array<i64: 1, 1, 20, 64>}]} {
    %0 = arith.index_cast %arg1 : i32 to index
    %c0 = arith.constant 0 : index
    %1 = memref.load %arg3[%0, %c0] : memref<3x3xf32, #tpu.memory_space<smem>>
    %2 = arith.index_cast %arg1 : i32 to index
    %c1 = arith.constant 1 : index
    %3 = memref.load %arg3[%2, %c1] : memref<3x3xf32, #tpu.memory_space<smem>>
    %4 = arith.index_cast %arg1 : i32 to index
    %c2 = arith.constant 2 : index
    %5 = memref.load %arg3[%4, %c2] : memref<3x3xf32, #tpu.memory_space<smem>>
    %c0_0 = arith.constant 0 : index
    %c0_1 = arith.constant 0 : index
    %c0_2 = arith.constant 0 : index
    %c0_3 = arith.constant 0 : index
    %6 = vector.load %arg5[%c0_0, %c0_1, %c0_2, %c0_3] : memref<1x1x20x64xf32, #tpu.memory_space<vmem>>, vector<1x1x20x64xf32>
    %7 = vector.shape_cast %6 : vector<1x1x20x64xf32> to vector<20x64xf32>
    %8 = arith.negf %7 : vector<20x64xf32>
    %9 = math.exp %8 : vector<20x64xf32>
    %cst = arith.constant 1.000000e+00 : f32
    %10 = vector.broadcast %cst : f32 to vector<20x64xf32>
    %11 = arith.addf %10, %9 : vector<20x64xf32>
    %12 = arith.divf %10, %11 : vector<20x64xf32>
    %c0_4 = arith.constant 0 : index
    %c0_5 = arith.constant 0 : index
    %13 = vector.load %arg4[%c0_4, %c0_5] : memref<2x64xf32, #tpu.memory_space<vmem>>, vector<2x64xf32>
    %14 = vector.extract_strided_slice %12 {offsets = [0, 0], sizes = [2, 64], strides = [1, 1]} : vector<20x64xf32> to vector<2x64xf32>
    %15 = vector.broadcast %1 : f32 to vector<2x64xf32>
    %16 = arith.mulf %14, %15 : vector<2x64xf32>
    %17 = arith.addf %16, %13 : vector<2x64xf32>
    %c0_6 = arith.constant 0 : index
    %c0_7 = arith.constant 0 : index
    %c0_8 = arith.constant 0 : index
    %c0_9 = arith.constant 0 : index
    %18 = vector.load %arg6[%c0_6, %c0_7, %c0_8, %c0_9] : memref<1x1x20x64xf32, #tpu.memory_space<vmem>>, vector<1x1x2x64xf32>
    %19 = vector.shape_cast %18 : vector<1x1x2x64xf32> to vector<2x64xf32>
    %20 = vector.shape_cast %17 : vector<2x64xf32> to vector<1x1x2x64xf32>
    tpu.vector_store %arg6[%c0_6, %c0_7, %c0_8, %c0_9], %20 {strides = array<i32>} : memref<1x1x20x64xf32, #tpu.memory_space<vmem>>, vector<1x1x2x64xf32>,
    %21 = vector.extract_strided_slice %12 {offsets = [2, 0], sizes = [1, 64], strides = [1, 1]} : vector<20x64xf32> to vector<1x64xf32>
    %22 = vector.extract_strided_slice %12 {offsets = [2, 0], sizes = [1, 64], strides = [1, 1]} : vector<20x64xf32> to vector<1x64xf32>
    %23 = arith.mulf %21, %22 : vector<1x64xf32>
    %24 = vector.broadcast %3 : f32 to vector<1x64xf32>
    %25 = arith.mulf %23, %24 : vector<1x64xf32>
    %c0_10 = arith.constant 0 : index
    %c0_11 = arith.constant 0 : index
    %c2_12 = arith.constant 2 : index
    %c0_13 = arith.constant 0 : index
    %26 = vector.load %arg6[%c0_10, %c0_11, %c2_12, %c0_13] : memref<1x1x20x64xf32, #tpu.memory_space<vmem>>, vector<1x1x1x64xf32>
    %27 = vector.shape_cast %26 : vector<1x1x1x64xf32> to vector<1x64xf32>
    %28 = vector.shape_cast %25 : vector<1x64xf32> to vector<1x1x1x64xf32>
    tpu.vector_store %arg6[%c0_10, %c0_11, %c2_12, %c0_13], %28 {strides = array<i32>} : memref<1x1x20x64xf32, #tpu.memory_space<vmem>>, vector<1x1x1x64xf32>,
    %29 = vector.extract_strided_slice %12 {offsets = [3, 0], sizes = [1, 64], strides = [1, 1]} : vector<20x64xf32> to vector<1x64xf32>
    %30 = vector.extract_strided_slice %12 {offsets = [3, 0], sizes = [1, 64], strides = [1, 1]} : vector<20x64xf32> to vector<1x64xf32>
    %31 = arith.mulf %29, %30 : vector<1x64xf32>
    %32 = vector.broadcast %5 : f32 to vector<1x64xf32>
    %33 = arith.mulf %31, %32 : vector<1x64xf32>
    %c0_14 = arith.constant 0 : index
    %c0_15 = arith.constant 0 : index
    %c3 = arith.constant 3 : index
    %c0_16 = arith.constant 0 : index
    %34 = vector.load %arg6[%c0_14, %c0_15, %c3, %c0_16] : memref<1x1x20x64xf32, #tpu.memory_space<vmem>>, vector<1x1x1x64xf32>
    %35 = vector.shape_cast %34 : vector<1x1x1x64xf32> to vector<1x64xf32>
    %36 = vector.shape_cast %33 : vector<1x64xf32> to vector<1x1x1x64xf32>
    tpu.vector_store %arg6[%c0_14, %c0_15, %c3, %c0_16], %36 {strides = array<i32>} : memref<1x1x20x64xf32, #tpu.memory_space<vmem>>, vector<1x1x1x64xf32>,
    %37 = vector.extract_strided_slice %12 {offsets = [4, 0], sizes = [16, 64], strides = [1, 1]} : vector<20x64xf32> to vector<16x64xf32>
    %c0_17 = arith.constant 0 : index
    %c0_18 = arith.constant 0 : index
    %c4 = arith.constant 4 : index
    %c0_19 = arith.constant 0 : index
    %38 = vector.load %arg6[%c0_17, %c0_18, %c4, %c0_19] : memref<1x1x20x64xf32, #tpu.memory_space<vmem>>, vector<1x1x16x64xf32>
    %39 = vector.shape_cast %38 : vector<1x1x16x64xf32> to vector<16x64xf32>
    %40 = vector.shape_cast %37 : vector<16x64xf32> to vector<1x1x16x64xf32>
    tpu.vector_store %arg6[%c0_17, %c0_18, %c4, %c0_19], %40 {strides = array<i32>} : memref<1x1x20x64xf32, #tpu.memory_space<vmem>>, vector<1x1x16x64xf32>,
    return
  }
  func.func @transform_0(%arg0: i32, %arg1: i32, %arg2: i32) -> (i32, i32) {
    %c0_i32 = arith.constant 0 : i32
    %c0_i32_0 = arith.constant 0 : i32
    %c0_i32_1 = arith.constant 0 : i32
    return %c0_i32, %c0_i32_0 : i32, i32
  }
  func.func @transform_1(%arg0: i32, %arg1: i32, %arg2: i32) -> (i32, i32) {
    %c0_i32 = arith.constant 0 : i32
    %c0_i32_0 = arith.constant 0 : i32
    return %c0_i32, %arg2 : i32, i32
  }
  func.func @transform_2(%arg0: i32, %arg1: i32, %arg2: i32) -> (i32, i32, i32, i32) {
    %c0_i32 = arith.constant 0 : i32
    %c0_i32_0 = arith.constant 0 : i32
    return %arg0, %arg1, %c0_i32, %arg2 : i32, i32, i32, i32
  }
  func.func @transform_3(%arg0: i32, %arg1: i32, %arg2: i32) -> (i32, i32, i32, i32) {
    %c0_i32 = arith.constant 0 : i32
    %c0_i32_0 = arith.constant 0 : i32
    return %arg0, %arg1, %c0_i32, %arg2 : i32, i32, i32, i32
  }
}

</mosaic_0001>

<bundles_post_ra>
// kernel: tpu_custom_call.1
= control target key start
LH: loop header
LB: loop body
LE: loop exit
PB: predicated region body
PF: predicated region fallthrough
CT: control target
= control target key end

     0   :  { %8 = vsyncpa [#allocation3], 0  ;;  %s612_s12 = smov 0   ;;  %s614_s13 = smov 0   ;;  %s697_s0 = inlined_call_operand.vmem [shape: f32[3,3], index: 0, kind: input, shape index: {}]   ;;  %s698_s1 = inlined_call_operand.vmem [shape: f32[2,64], index: 1, kind: input, shape index: {}]   ;;  %s699_s2 = inlined_call_operand.vmem [shape: f32[2,3,20,64], index: 2, kind: input, shape index: {}]   ;;  %s700_s3 = inlined_call_operand.vmem [shape: f32[2,3,20,64], index: 3, kind: output, shape index: {}]  }
   0x1   :  { %s616_s14 = smov 0   ;;  %s618_s15 = smov 0  }
   0x2   :  { %s620_s16 = smov 0  }
   0x3 LB: > { %s451_s17 = sadd.s32 4294967295, %s589_s16   ;;  %s29_s18 = sadd.s32 1, %s581_s14  ;;  %s589_s16 = sphi %s620_s16, %s14_s16   ;;  %s585_s15 = sphi %s618_s15, %s706_s15   ;;  %s581_s14 = sphi %s616_s14, %s705_s14   ;;  %s577_s13 = sphi %s614_s13, %s704_s13   ;;  %s573_s12 = sphi %s612_s12, %s703_s12  }
   0x4   : > { %p31_p0 = scmp.ge.s32.totalorder %s29_s18, 3  ;;  %s33_s19 = sadd.s32 1, %s585_s15 }
   0x5   : > { %p453_p1 = scmp.ge.s32.totalorder %s589_s16, 1  ;;  %p145_p2 = scmp.lt.s32.totalorder %s589_s16, 7 }
   0x6   : > { %s708_s18 = smov (%p31_p0, %s29_s18), 0  ;;  %s710_s19 = smov (!%p31_p0, %s33_s19), %s585_s15 }
   0x7   : > { %p645_p3 = pnand %p453_p1, %p145_p2  ;;  %p35_p4 = scmp.ge.s32.totalorder %s710_s19, 2 }
   0x8   : > { %p649_p5 = scmp.eq.s32.totalorder %s451_s17, 0  ;;  %s158_s24 = sshll.u32 %s697_s0, 4  ;;  %s159_s24 = int_to_ptr.vmem [resolvable:$true] %s158_s24 }
   0x9   : > { %p473_p6 = pneg %p645_p3  ;;  %s712_s19 = smov (%p35_p4, %s710_s19), 0 }
   0xa   : > { %s532_s25 = scalar_lea.vmem %s159_s24, 64  ;;  %p540_p12 = scmp.lt.s32.totalorder %s159_s24, %s159_s24 }
   0xb   : > { %p474_p7 = pnand %p649_p5, %p473_p6  ;;  %p533_p8 = scmp.ne.s32.totalorder %s159_s24, %s532_s25 }
   0xc   : > { %p541_p13 = scmp.lt.s32.totalorder %s532_s25, %s532_s25 }
   0xd   : > { %p534_p9 = pneg %p474_p7 }
   0xe   : > { %p542_p0 = por %p541_p13, %p540_p12 }
   0xf   : > { %p535_p10 = pnand %p534_p9, %p533_p8 }
  0x11   : > { %p536_p11 = pneg %p535_p10 }
  0x13   : > { %p543_p1 = pnand %p542_p0, %p536_p11 }
  0x15   : > { %546 = shalt.err (!%p543_p1)
}
  0x16   : > { %s591_s26 = smov [#allocation2]   ;;  %193 = sbr.rel (%p645_p3) target bundleno = 80 (0x50), region = 32 }
  0x17   : > { %476 = dma.vmem_to_smem (!%p474_p7), %s159_s24, 64, %s591_s26, [#allocation3]  }
  0x1b   : > { %568 = dma.done.wait (%p649_p5), [#allocation3], 64  }
  0x1c   : > { %570 = vsyncadd (%p649_p5), [#allocation3], 4294967232 }
  0x1d   : > { %199 = sfence }
  0x1e   : > { %p240_p2 = scmp.lt.s32.totalorder %s577_s13, 1  ;;  %p242_p4 = scmp.lt.s32.totalorder %s573_s12, 2  ;;  %vm306_vm0 = vcmask 523268   ;;  %vm308_vm1 = vcmask 523264   ;;  %v291_v14 = vld [vmem:[%s698_s1] sm:$0x3] }
  0x1f   : > { %s461_s8 = sshll.u32 %s573_s12, 7  ;;  %vm310_vm2 = vcmask 519168   ;;  %vm295_vm3 = vcmask 517120   ;;  %vm300_vm4 = vcmask 518146   ;;  %vm304_vm5 = vcmask 519171  }
  0x20   : > { %s714_s13 = smov (!%p240_p2, %s577_s13), 1  ;;  %s266_s9 = sadd.s32 1, %s461_s8 }
  0x21   : > { %s243_s27 = scalar_select %p242_p4, %s573_s12, 2 }
  0x22   : > { %s468_s28 = smul.u32 9, %s714_s13  ;;  %s268_s10 = sadd.s32 2, %s461_s8 }
  0x23   : > { %s467_s29 = smul.u32 3, %s243_s27  ;;  %s265_s11 = sld [smem:[#allocation2 + %s461_s8]] }
  0x24   : > { %s267_s13 = sld [smem:[#allocation2 + %s266_s9]] }
  0x25   : > { %s249_s30 = sadd.s32 %s468_s28, %s467_s29  ;;  %s269_s17 = sld [smem:[#allocation2 + %s268_s10]] }
  0x26   : > { %s459_s4 = sshll.u32 %s249_s30, 3 }
  0x27   : > { %s251_s7 = scalar_lea.vmem %s699_s2, %s459_s4  ;;  %s263_s22 = scalar_lea.vmem %s700_s3, %s459_s4 }
  0x28   : > { %v270_v0 = vld [vmem:[%s251_s7] sm:$0xff]  ;;  %v271_v1 = vld [vmem:[%s251_s7 + $0x8] sm:$0xff]  ;;  %v272_v2 = vld [vmem:[%s251_s7 + $0x10] sm:$0xf] }
  0x29   : > { %v462_v3 = vmul.f32 -1.442695, %v270_v0  ;;  %v463_v4 = vmul.f32 -1.442695, %v271_v1  ;;  %v464_v5 = vmul.f32 -1.442695, %v272_v2  ;;  %v292_v12 = vstv %s265_s11 }
  0x2a   : > { %v298_v15 = vstv %s267_s13 }
  0x2b   : > { %520 = vpow2.f32 %v462_v3  ;;  %v302_v16 = vstv %s269_s17 }
  0x2c   : > { %522 = vpow2.f32 %v463_v4 }
  0x2d   : > { %524 = vpow2.f32 %v464_v5 }
  0x38   : > { %v521_v6 = vpop.eup %520 }
  0x39   : > { %v523_v7 = vpop.eup %522  ;;  %v282_v8 = vadd.f32 1.0, %v521_v6 }
  0x3a   : > { %v525_v9 = vpop.eup %524  ;;  %v283_v10 = vadd.f32 1.0, %v523_v7 }
  0x3b   : > { %v284_v11 = vadd.f32 1.0, %v525_v9  ;;  %526 = vrcp.f32 %v282_v8 }
  0x3c   : > { %528 = vrcp.f32 %v283_v10 }
  0x3d   : > { %530 = vrcp.f32 %v284_v11 }
  0x48   : > { %v527_v13 = vpop.eup %526 }
  0x49   : > { %v529_v17 = vpop.eup %528  ;;  %v293_v18 = vmul.f32 %v527_v13, %v292_v12  ;;  %v297_v19 = vmul.f32 %v527_v13, %v527_v13  ;;  %307 = vst.msk [vmem:[%s263_s22] sm:$0xf0] %vm306_vm0, %v527_v13 }
  0x4a   : > { %v531_v20 = vpop.eup %530  ;;  %309 = vst.msk [vmem:[%s263_s22 + $0x8] sm:$0xff] %vm308_vm1, %v529_v17 }
  0x4b   : > { %v294_v21 = vadd.f32 %v293_v18, %v291_v14  ;;  %v299_v22 = vmul.f32 %v298_v15, %v297_v19  ;;  %v303_v23 = vmul.f32 %v302_v16, %v297_v19  ;;  %311 = vst.msk [vmem:[%s263_s22 + $0x10] sm:$0xf] %vm310_vm2, %v531_v20 }
  0x4d   : > { %296 = vst.msk [vmem:[%s263_s22] sm:$0x3] %vm295_vm3, %v294_v21 }
  0x4e   : > { %301 = vst.msk [vmem:[%s263_s22] sm:$0x4] %vm300_vm4, %v299_v22 }
  0x4f   : > { %305 = vst.msk [vmem:[%s263_s22] sm:$0x8] %vm304_vm5, %v303_v23 }
  0x50 PF: > { %s14_s16 = sadd.s32 1, %s589_s16   ;;  %s703_s12 = smov %s581_s14 }
  0x51   : > { %p11_p3 = scmp.ge.s32.totalorder %s14_s16, 8   ;;  %s704_s13 = smov %s585_s15 }
  0x52   : > { %s705_s14 = smov %s708_s18  ;;  %s706_s15 = smov %s712_s19 }
  0x53   :  { %13 = sbr.rel (!%p11_p3) target bundleno = 3 (0x3), region = 70 }
  0x58   :  { %347 = vsyncpa [#allocation3], 1 }
  0x59   :  { %349 = vsyncpa [#allocation3 + $0x1], 1 }

</bundles_post_ra>
